<compile_context>
chip_gen: v5e
topology: v5e:2x2
jax: 0.10.0
libtpu: 0.0.40
codegen_flags: <defaults>
</compile_context>

<pallas_src>
import functools

import jax
import jax.numpy as jnp
from jax.experimental import pallas as pl
from jax.experimental.pallas import tpu as pltpu


def _round_up(x, n):
    return (x + n - 1) // n * n


def _swiglu_kernel(x_ref, w1g_ref, w1u_ref, w2_ref, o_ref, acc_ref):
    # x_ref:   (tm, D)   activation tile (resident across the h axis)
    # w1g_ref: (D, th)   gate half of W1, pre-transposed
    # w1u_ref: (D, th)   up   half of W1, pre-transposed
    # w2_ref:  (th, D)   W2 pre-transposed tile
    # o_ref:   (tm, D)   output tile (written once, on the last h step)
    # acc_ref: (tm, D)   f32 accumulator scratch
    h = pl.program_id(1)

    @pl.when(h == 0)
    def _init():
        acc_ref[...] = jnp.zeros_like(acc_ref)

    x = x_ref[...]
    # Gate / up projections for this hidden tile; f32 accumulation on the MXU.
    g = jnp.dot(x, w1g_ref[...], preferred_element_type=jnp.float32)  # (tm, th)
    u = jnp.dot(x, w1u_ref[...], preferred_element_type=jnp.float32)  # (tm, th)
    # SiLU gating in f32, then down-project this hidden tile and accumulate.
    gated = (g * jax.nn.sigmoid(g)) * u
    acc_ref[...] += jnp.dot(gated.astype(w2_ref.dtype), w2_ref[...],
                            preferred_element_type=jnp.float32)

    @pl.when(h == pl.num_programs(1) - 1)
    def _finalize():
        o_ref[...] = acc_ref[...].astype(o_ref.dtype)


@functools.partial(jax.jit, static_argnames=("block_m", "block_h"))
def _swiglu_flat(xm, w1g_t, w1u_t, w2_t, *, block_m, block_h):
    m, d = xm.shape
    hdim = w1g_t.shape[1]
    out_dtype = xm.dtype

    # Pad M so the grid is rectangular (ragged last tile -> zero-padded rows).
    m_pad = _round_up(m, block_m)
    if m_pad != m:
        xm = jnp.pad(xm, ((0, m_pad - m), (0, 0)))

    # Matmuls run in the weights' dtype (bf16 by default); cast activations once.
    xm = xm.astype(w1g_t.dtype)

    n_m = m_pad // block_m
    n_h = hdim // block_h

    cost = pl.CostEstimate(
        flops=int(6 * m_pad * d * hdim),          # three (tm,D)x(D,th)-class matmuls
        transcendentals=int(m_pad * hdim),        # sigmoid
        bytes_accessed=int(
            xm.size * xm.dtype.itemsize
            + (w1g_t.size + w1u_t.size + w2_t.size) * w1g_t.dtype.itemsize
            + m_pad * d * out_dtype.itemsize),
    )

    # NOTE: weight blocks stream along the h axis, so default double-buffering
    # is what we want; when n_h == 1 they are constant and could be
    # single-buffered (pl.Buffered(1)) to halve weight VMEM if that ever binds.
    out = pl.pallas_call(
        _swiglu_kernel,
        out_shape=jax.ShapeDtypeStruct((m_pad, d), out_dtype),
        grid_spec=pltpu.PrefetchScalarGridSpec(
            num_scalar_prefetch=0,
            grid=(n_m, n_h),                                   # reduction axis last
            in_specs=[
                pl.BlockSpec((block_m, d), lambda i, h: (i, 0)),   # x (resident over h)
                pl.BlockSpec((d, block_h), lambda i, h: (0, h)),   # W1 gate tile
                pl.BlockSpec((d, block_h), lambda i, h: (0, h)),   # W1 up tile
                pl.BlockSpec((block_h, d), lambda i, h: (h, 0)),   # W2 tile
            ],
            out_specs=pl.BlockSpec((block_m, d), lambda i, h: (i, 0)),
            scratch_shapes=[pltpu.VMEM((block_m, d), jnp.float32)],
        ),
        compiler_params=pltpu.CompilerParams(
            dimension_semantics=("parallel", "arbitrary"),
            # Above every generation's scoped default (16/32/32 MiB) but under
            # v7x's 64 MiB physical; raise toward ~100 MiB on v5e/v6e if you
            # want fully-resident weights for D <= ~2048.
            vmem_limit_bytes=48 * 1024 * 1024,
        ),
        cost_estimate=cost,
    )(xm, w1g_t, w1u_t, w2_t)

    return out[:m]


def swiglu(x, w1, w2, *, block_m=256, compute_dtype=jnp.bfloat16):
    """SwiGLU forward.

    x : (..., D)
    w1: (2D, D)  PyTorch nn.Linear(dim, 2*dim, bias=False) weight
    w2: (D, D)   PyTorch nn.Linear(dim, dim,  bias=False) weight
    """
    d = x.shape[-1]
    assert w1.shape == (2 * d, d) and w2.shape == (d, d)

    # Weight prep once, OUTSIDE the jitted kernel call: split W1 into gate/up
    # halves (matching torch .chunk(2, dim=-1)), transpose to (in, out) so the
    # kernel does plain row-major MXU matmuls, and cast to the matmul dtype.
    w1g_t = jnp.asarray(w1[:d].T, compute_dtype)   # (D, D)
    w1u_t = jnp.asarray(w1[d:].T, compute_dtype)   # (D, D)
    w2_t = jnp.asarray(w2.T, compute_dtype)        # (D, D)

    # Hidden-dim tile: a multiple of 128 lanes, or the full hidden dim if it is
    # small / not 128-divisible.
    hdim = d
    block_h = hdim
    for cand in (1024, 512, 256, 128):
        if hdim % cand == 0:
            block_h = cand
            break

    # M tile: fixed 256 rows by default (good HBM/MXU overlap, bounded VMEM,
    # many grid steps for pipelining + both v7x TensorCores), shrunk for tiny
    # inputs and kept 8-row (sublane) aligned.
    xm = x.reshape(-1, d)
    m = xm.shape[0]
    block_m_eff = min(_round_up(block_m, 8), _round_up(m, 8))

    out = _swiglu_flat(xm, w1g_t, w1u_t, w2_t,
                       block_m=block_m_eff, block_h=block_h)
    return out.reshape(x.shape)


def _swiglu_ref(x, w1, w2):
    h = x @ w1.T
    d = x.shape[-1]
    x1, x2 = h[..., :d], h[..., d:]
    return (jax.nn.silu(x1) * x2) @ w2.T


if __name__ == "__main__":
    key = jax.random.PRNGKey(0)
    k_x, k_w1, k_w2 = jax.random.split(key, 3)

    batch, seq, dim = 2, 8, 128
    x = jax.random.normal(k_x, (batch, seq, dim), dtype=jnp.float32)
    # Deterministic "Linear" weights, PyTorch layout (out_features, in_features).
    w1 = jax.random.normal(k_w1, (2 * dim, dim), dtype=jnp.float32) * (1.0 / dim ** 0.5)
    w2 = jax.random.normal(k_w2, (dim, dim), dtype=jnp.float32) * (1.0 / dim ** 0.5)

    ref = _swiglu_ref(x, w1, w2)

    # Default path: bf16 matmuls (MXU-peak dtype), f32 accumulation + gating.
    out_bf16 = swiglu(x, w1, w2)
    jax.block_until_ready(out_bf16)
    assert out_bf16.shape == (batch, seq, dim)
    assert jnp.allclose(out_bf16, ref, atol=5e-2, rtol=5e-2)

    # f32 compute path for a tighter numerical check.
    out_f32 = swiglu(x, w1, w2, compute_dtype=jnp.float32)
    jax.block_until_ready(out_f32)
    assert jnp.allclose(out_f32, ref, atol=2e-3, rtol=2e-3)

    print("KERNEL_OK")
</pallas_src>

<mosaic_0001>
module attributes {stable_mosaic.version = 11 : i64} {
  func.func @_swiglu_kernel(%arg0: i32, %arg1: i32, %arg2: memref<16x128xbf16, #tpu.memory_space<vmem>>, %arg3: memref<128x128xbf16, #tpu.memory_space<vmem>>, %arg4: memref<128x128xbf16, #tpu.memory_space<vmem>>, %arg5: memref<128x128xbf16, #tpu.memory_space<vmem>>, %arg6: memref<16x128xf32, #tpu.memory_space<vmem>>, %arg7: memref<16x128xf32, #tpu.memory_space<vmem>>) attributes {dimension_semantics = [#tpu.dimension_semantics<parallel>, #tpu.dimension_semantics<arbitrary>], iteration_bounds = array<i64: 1, 1>, scalar_prefetch = 0 : i64, scratch_operands = 1 : i64, tpu.core_type = #tpu.core_type<tc>, window_params = [{transform_indices = @transform_0, window_bounds = array<i64: 16, 128>}, {transform_indices = @transform_1, window_bounds = array<i64: 128, 128>}, {transform_indices = @transform_2, window_bounds = array<i64: 128, 128>}, {transform_indices = @transform_3, window_bounds = array<i64: 128, 128>}, {transform_indices = @transform_4, window_bounds = array<i64: 16, 128>}]} {
    %c0_i32 = arith.constant 0 : i32
    %0 = arith.cmpi eq, %arg1, %c0_i32 : i32
    %1 = arith.extui %0 : i1 to i32
    %c0_i32_0 = arith.constant 0 : i32
    %2 = arith.cmpi ne, %1, %c0_i32_0 : i32
    scf.if %2 {
      %cst_17 = arith.constant 0.000000e+00 : f32
      %24 = vector.broadcast %cst_17 : f32 to vector<16x128xf32>
      %c0_18 = arith.constant 0 : index
      %c0_19 = arith.constant 0 : index
      %25 = vector.load %arg7[%c0_18, %c0_19] : memref<16x128xf32, #tpu.memory_space<vmem>>, vector<16x128xf32>
      tpu.vector_store %arg7[%c0_18, %c0_19], %24 {strides = array<i32>} : memref<16x128xf32, #tpu.memory_space<vmem>>, vector<16x128xf32>,
    } else {
    }
    %c0 = arith.constant 0 : index
    %c0_1 = arith.constant 0 : index
    %3 = vector.load %arg2[%c0, %c0_1] : memref<16x128xbf16, #tpu.memory_space<vmem>>, vector<16x128xbf16>
    %c0_2 = arith.constant 0 : index
    %c0_3 = arith.constant 0 : index
    %4 = vector.load %arg3[%c0_2, %c0_3] : memref<128x128xbf16, #tpu.memory_space<vmem>>, vector<128x128xbf16>
    %cst = arith.constant dense<0.000000e+00> : vector<16x128xf32>
    %5 = tpu.matmul %3, %4, %cst {dimension_numbers = #tpu.dot_dimension_numbers<[1], [0], [0], [1], [0, 0, 1, 1], [], []>} : vector<16x128xbf16>, vector<128x128xbf16>, vector<16x128xf32> -> vector<16x128xf32>
    %c0_4 = arith.constant 0 : index
    %c0_5 = arith.constant 0 : index
    %6 = vector.load %arg4[%c0_4, %c0_5] : memref<128x128xbf16, #tpu.memory_space<vmem>>, vector<128x128xbf16>
    %cst_6 = arith.constant dense<0.000000e+00> : vector<16x128xf32>
    %7 = tpu.matmul %3, %6, %cst_6 {dimension_numbers = #tpu.dot_dimension_numbers<[1], [0], [0], [1], [0, 0, 1, 1], [], []>} : vector<16x128xbf16>, vector<128x128xbf16>, vector<16x128xf32> -> vector<16x128xf32>
    %8 = arith.negf %5 : vector<16x128xf32>
    %9 = math.exp %8 : vector<16x128xf32>
    %cst_7 = arith.constant 1.000000e+00 : f32
    %10 = vector.broadcast %cst_7 : f32 to vector<16x128xf32>
    %11 = arith.addf %10, %9 : vector<16x128xf32>
    %12 = arith.divf %10, %11 : vector<16x128xf32>
    %13 = arith.mulf %5, %12 : vector<16x128xf32>
    %14 = arith.mulf %13, %7 : vector<16x128xf32>
    %c0_8 = arith.constant 0 : index
    %c0_9 = arith.constant 0 : index
    %15 = vector.load %arg7[%c0_8, %c0_9] : memref<16x128xf32, #tpu.memory_space<vmem>>, vector<16x128xf32>
    %16 = arith.truncf %14 : vector<16x128xf32> to vector<16x128xbf16>
    %c0_10 = arith.constant 0 : index
    %c0_11 = arith.constant 0 : index
    %17 = vector.load %arg5[%c0_10, %c0_11] : memref<128x128xbf16, #tpu.memory_space<vmem>>, vector<128x128xbf16>
    %cst_12 = arith.constant dense<0.000000e+00> : vector<16x128xf32>
    %18 = tpu.matmul %16, %17, %cst_12 {dimension_numbers = #tpu.dot_dimension_numbers<[1], [0], [0], [1], [0, 0, 1, 1], [], []>} : vector<16x128xbf16>, vector<128x128xbf16>, vector<16x128xf32> -> vector<16x128xf32>
    %19 = arith.addf %15, %18 : vector<16x128xf32>
    %c0_13 = arith.constant 0 : index
    %c0_14 = arith.constant 0 : index
    %20 = vector.load %arg7[%c0_13, %c0_14] : memref<16x128xf32, #tpu.memory_space<vmem>>, vector<16x128xf32>
    tpu.vector_store %arg7[%c0_13, %c0_14], %19 {strides = array<i32>} : memref<16x128xf32, #tpu.memory_space<vmem>>, vector<16x128xf32>,
    %c0_i32_15 = arith.constant 0 : i32
    %21 = arith.cmpi eq, %arg1, %c0_i32_15 : i32
    %22 = arith.extui %21 : i1 to i32
    %c0_i32_16 = arith.constant 0 : i32
    %23 = arith.cmpi ne, %22, %c0_i32_16 : i32
    scf.if %23 {
      %c0_17 = arith.constant 0 : index
      %c0_18 = arith.constant 0 : index
      %24 = vector.load %arg7[%c0_17, %c0_18] : memref<16x128xf32, #tpu.memory_space<vmem>>, vector<16x128xf32>
      %c0_19 = arith.constant 0 : index
      %c0_20 = arith.constant 0 : index
      %25 = vector.load %arg6[%c0_19, %c0_20] : memref<16x128xf32, #tpu.memory_space<vmem>>, vector<16x128xf32>
      tpu.vector_store %arg6[%c0_19, %c0_20], %24 {strides = array<i32>} : memref<16x128xf32, #tpu.memory_space<vmem>>, vector<16x128xf32>,
    } else {
    }
    return
  }
  func.func @transform_0(%arg0: i32, %arg1: i32) -> (i32, i32) {
    %c0_i32 = arith.constant 0 : i32
    %c0_i32_0 = arith.constant 0 : i32
    return %arg0, %c0_i32 : i32, i32
  }
  func.func @transform_1(%arg0: i32, %arg1: i32) -> (i32, i32) {
    %c0_i32 = arith.constant 0 : i32
    %c0_i32_0 = arith.constant 0 : i32
    return %c0_i32, %arg1 : i32, i32
  }
  func.func @transform_2(%arg0: i32, %arg1: i32) -> (i32, i32) {
    %c0_i32 = arith.constant 0 : i32
    %c0_i32_0 = arith.constant 0 : i32
    return %c0_i32, %arg1 : i32, i32
  }
  func.func @transform_3(%arg0: i32, %arg1: i32) -> (i32, i32) {
    %c0_i32 = arith.constant 0 : i32
    %c0_i32_0 = arith.constant 0 : i32
    return %arg1, %c0_i32 : i32, i32
  }
  func.func @transform_4(%arg0: i32, %arg1: i32) -> (i32, i32) {
    %c0_i32 = arith.constant 0 : i32
    %c0_i32_0 = arith.constant 0 : i32
    return %arg0, %c0_i32 : i32, i32
  }
}

</mosaic_0001>

<bundles_post_ra>
// kernel: _swiglu_flat.1
= control target key start
LH: loop header
LB: loop body
LE: loop exit
PB: predicated region body
PF: predicated region fallthrough
CT: control target
= control target key end

     0   :  { %9 = vsyncpa [#allocation4], 0  ;;  %s682_s0 = inlined_call_operand.vmem [shape: bf16[16,128], index: 0, kind: input, shape index: {}]   ;;  %s683_s1 = inlined_call_operand.hbm [shape: bf16[128,128], index: 1, kind: input, shape index: {}]   ;;  %s684_s2 = inlined_call_operand.hbm [shape: bf16[128,128], index: 2, kind: input, shape index: {}]   ;;  %s685_s3 = inlined_call_operand.hbm [shape: bf16[128,128], index: 3, kind: input, shape index: {}]   ;;  %s686_s4 = inlined_call_operand.hbm [shape: f32[16,128], index: 4, kind: output, shape index: {}]  }
   0x1   :  { %10 = vsyncpa [#allocation7], 0 }
   0x2   :  { %11 = vsyncpa [#allocation5], 0  ;;  %s31_s17 = sshll.u32 %s684_s2, 4  ;;  %s634_s18 = smov [#allocation6]   ;;  %s32_s17 = int_to_ptr.hbm [resolvable:$true] %s31_s17 }
   0x3   :  { %s33_s19 = sshll.u32 %s634_s18, 4  ;;  %s18_s22 = sshll.u32 %s683_s1, 4  ;;  %s34_s19 = int_to_ptr.vmem [resolvable:$true] %s33_s19  ;;  %s19_s22 = int_to_ptr.hbm [resolvable:$true] %s18_s22 }
   0x4   :  { %s635_s23 = smov 64   ;;  %s636_s24 = smov 4  }
   0x5   :  { %39 = dma.hbm_to_vmem [thread:$0]  %s32_s17, 1024, %s34_s19, [#allocation7], %s635_s23, %s635_s23, %s636_s24  }
   0x6   :  { %s637_s25 = smov [#allocation3]   ;;  %s44_s29 = sshll.u32 %s685_s3, 4  ;;  %s45_s29 = int_to_ptr.hbm [resolvable:$true] %s44_s29 }
   0x7   :  { %s20_s26 = sshll.u32 %s637_s25, 4  ;;  %s638_s2 = smov [#allocation8]   ;;  %s21_s26 = int_to_ptr.vmem [resolvable:$true] %s20_s26 }
   0x8   :  { %26 = dma.hbm_to_vmem [thread:$0]  %s19_s22, 1024, %s21_s26, [#allocation4], %s635_s23, %s635_s23, %s636_s24  }
   0x9   :  { %s46_s30 = sshll.u32 %s638_s2, 4  ;;  %s47_s30 = int_to_ptr.vmem [resolvable:$true] %s46_s30 }
   0xa   :  { %52 = dma.hbm_to_vmem [thread:$0]  %s45_s29, 1024, %s47_s30, [#allocation7], %s635_s23, %s635_s23, %s636_s24  }
   0xb   :  { %628 = dma.done.wait [#allocation4], 1024  }
   0xc   :  { %629 = vsyncadd [#allocation4], 4294966272 }
   0xd   :  { %630 = dma.done.wait [#allocation7], 2048  }
   0xe   :  { %631 = vsyncadd [#allocation7], 4294965248  ;;  %v499_v0 = vld [vmem:[#allocation3 + $0x38] sm:$0xff]  ;;  %v498_v1 = vld [vmem:[#allocation3 + $0x30] sm:$0xff]  ;;  %s375_s8 = sshll.u32 %s686_s4, 4  ;;  %s640_s9 = smov 128   ;;  %s376_s8 = int_to_ptr.hbm [resolvable:$true] %s375_s8 }
   0xf   :  { %143 = vmatpush.bf16.msra.mxu0 %v499_v0  ;;  %v507_v2 = vld [vmem:[#allocation6 + $0x38] sm:$0xff]  ;;  %v506_v3 = vld [vmem:[#allocation6 + $0x30] sm:$0xff]  ;;  %v497_v4 = vld [vmem:[#allocation3 + $0x28] sm:$0xff]  ;;  %s641_s10 = smov 8  }
  0x10   :  { %221 = vmatpush.bf16.msra.mxu1 %v507_v2  ;;  %v505_v5 = vld [vmem:[#allocation6 + $0x28] sm:$0xff]  ;;  %v496_v6 = vld [vmem:[#allocation3 + $0x20] sm:$0xff]  ;;  %v495_v8 = vld [vmem:[#allocation3 + $0x18] sm:$0xff] }
  0x11   :  { %v504_v7 = vld [vmem:[#allocation6 + $0x20] sm:$0xff]  ;;  %v503_v9 = vld [vmem:[#allocation6 + $0x18] sm:$0xff]  ;;  %v494_v10 = vld [vmem:[#allocation3 + $0x10] sm:$0xff] }
  0x12   :  { %v502_v11 = vld [vmem:[#allocation6 + $0x10] sm:$0xff]  ;;  %v493_v12 = vld [vmem:[#allocation3 + $0x8] sm:$0xff]  ;;  %v492_v14 = vld [vmem:[#allocation3] sm:$0xff] }
  0x13   :  { %144 = vmatpush.bf16.msra.mxu0 %v498_v1  ;;  %v501_v13 = vld [vmem:[#allocation6 + $0x8] sm:$0xff]  ;;  %v500_v15 = vld [vmem:[#allocation6] sm:$0xff]  ;;  %v515_v17 = vld [vmem:[#allocation8 + $0x38] sm:$0xff] }
  0x14   :  { %222 = vmatpush.bf16.msra.mxu1 %v506_v3  ;;  %v491_v16 = vld [vmem:[%s682_s0] sm:$0xff]  ;;  %344 = vmatpush.bf16.msra.mxu2 %v515_v17  ;;  %v514_v18 = vld [vmem:[#allocation8 + $0x30] sm:$0xff]  ;;  %v513_v19 = vld [vmem:[#allocation8 + $0x28] sm:$0xff]  ;;  %s639_s0 = smov [#allocation9]  }
  0x15   :  { %v512_v20 = vld [vmem:[#allocation8 + $0x20] sm:$0xff]  ;;  %v511_v21 = vld [vmem:[#allocation8 + $0x18] sm:$0xff]  ;;  %v510_v22 = vld [vmem:[#allocation8 + $0x10] sm:$0xff]  ;;  %s373_s5 = sshll.u32 %s639_s0, 4  ;;  %s374_s5 = int_to_ptr.vmem [resolvable:$true] %s373_s5 }
  0x16   :  { %v509_v25 = vld [vmem:[#allocation8 + $0x8] sm:$0xff]  ;;  %v508_v26 = vld [vmem:[#allocation8] sm:$0xff] }
  0x17   :  { %145 = vmatpush.bf16.msra.mxu0 %v497_v4 }
  0x18   :  { %223 = vmatpush.bf16.msra.mxu1 %v505_v5  ;;  %345 = vmatpush.bf16.msra.mxu2 %v514_v18 }
  0x1b   :  { %146 = vmatpush.bf16.msra.mxu0 %v496_v6 }
  0x1c   :  { %224 = vmatpush.bf16.msra.mxu1 %v504_v7  ;;  %346 = vmatpush.bf16.msra.mxu2 %v513_v19 }
  0x1f   :  { %147 = vmatpush.bf16.msra.mxu0 %v495_v8 }
  0x20   :  { %225 = vmatpush.bf16.msra.mxu1 %v503_v9  ;;  %347 = vmatpush.bf16.msra.mxu2 %v512_v20 }
  0x23   :  { %148 = vmatpush.bf16.msra.mxu0 %v494_v10 }
  0x24   :  { %226 = vmatpush.bf16.msra.mxu1 %v502_v11  ;;  %348 = vmatpush.bf16.msra.mxu2 %v511_v21 }
  0x27   :  { %149 = vmatpush.bf16.msra.mxu0 %v493_v12 }
  0x28   :  { %227 = vmatpush.bf16.msra.mxu1 %v501_v13  ;;  %349 = vmatpush.bf16.msra.mxu2 %v510_v22 }
  0x2b   :  { %150 = vmatpush.bf16.msra.mxu0 %v492_v14 }
  0x2c   :  { %228 = vmatpush.bf16.msra.mxu1 %v500_v15  ;;  %350 = vmatpush.bf16.msra.mxu2 %v509_v25 }
  0x2e   :  { %151 = vmatmul.bf16.vlgmr.msra.gmra.mxu0 %v491_v16 }
  0x2f   :  { %229 = vmatmul.bf16.vlgmr.msra.gmra.mxu1 %v491_v16 }
  0x30   :  { %351 = vmatpush.bf16.msra.mxu2 %v508_v26 }
  0xab   :  { %v152_v23 = vpop.f32.mrf.mxu0 }
  0xac   :  { %v457_v24 = vmul.f32 -1.442695, %v152_v23  ;;  %v230_v42 = vpop.f32.mrf.mxu1 }
  0xae   :  { %524 = vpow2.f32 %v457_v24 }
  0xb3   :  { %v154_v27 = vpop.f32.mrf.mxu0 }
  0xb4   :  { %v525_v28 = vpop.eup %524  ;;  %v458_v29 = vmul.f32 -1.442695, %v154_v27  ;;  %v232_v56 = vpop.f32.mrf.mxu1 }
  0xb5   :  { %v241_v30 = vadd.f32 1.0, %v525_v28 }
  0xb6   :  { %526 = vpow2.f32 %v458_v29 }
  0xb7   :  { %528 = vrcp.f32 %v241_v30  ;;  %v254_v39 = vand.u32 2147483648, %v241_v30  ;;  %vm248_vm1 = vweird.f32 %v241_v30  ;;  %v252_v40 = vand.u32 2147483647, %v241_v30 }
  0xb9   :  { %v255_v45 = vor.u32 1.1754944e-38, %v254_v39  ;;  %vm253_vm3 = vcmp.eq.f32.partialorder %v252_v40, 8.507059e+37 }
  0xbc   :  { %v527_v31 = vpop.eup %526 }
  0xbd   :  { %v529_v32 = vpop.eup %528  ;;  %v242_v33 = vadd.f32 1.0, %v527_v31 }
  0xbe   :  { %v244_v34 = vmul.f32 %v529_v32, %v241_v30  ;;  %vm249_vm0 = vweird.f32 %v529_v32 }
  0xbf   :  { %530 = vrcp.f32 %v242_v33  ;;  %vm250_vm2 = vmor %vm248_vm1, %vm249_vm0  ;;  %v269_v46 = vand.u32 2147483648, %v242_v33  ;;  %v267_v48 = vand.u32 2147483647, %v242_v33  ;;  %vm263_vm5 = vweird.f32 %v242_v33 }
  0xc0   :  { %v245_v35 = vsub.f32 1.0, %v244_v34 }
  0xc1   :  { %v270_v51 = vor.u32 1.1754944e-38, %v269_v46  ;;  %vm268_vm7 = vcmp.eq.f32.partialorder %v267_v48, 8.507059e+37 }
  0xc2   :  { %v246_v36 = vmul.f32 %v529_v32, %v245_v35 }
  0xc4   :  { %v247_v37 = vadd.f32 %v529_v32, %v246_v36 }
  0xc5   :  { %v531_v38 = vpop.eup %530 }
  0xc6   :  { %v259_v41 = vmul.f32 %v531_v38, %v242_v33  ;;  %v251_v43 = vsel %vm250_vm2, %v529_v32, %v247_v37  ;;  %vm264_vm4 = vweird.f32 %v531_v38 }
  0xc7   :  { %v256_v49 = vsel %vm253_vm3, %v255_v45, %v251_v43  ;;  %vm265_vm6 = vmor %vm263_vm5, %vm264_vm4 }
  0xc8   :  { %v260_v44 = vsub.f32 1.0, %v259_v41  ;;  %v273_v52 = vmul.f32 %v256_v49, %v152_v23 }
  0xca   :  { %v261_v47 = vmul.f32 %v531_v38, %v260_v44  ;;  %v275_v57 = vmul.f32 %v273_v52, %v230_v42 }
  0xcc   :  { %v262_v50 = vadd.f32 %v531_v38, %v261_v47 }
  0xce   :  { %v266_v53 = vsel %vm265_vm6, %v531_v38, %v262_v50 }
  0xcf   :  { %v271_v54 = vsel %vm268_vm7, %v270_v51, %v266_v53 }
  0xd0   :  { %v274_v55 = vmul.f32 %v271_v54, %v154_v27 }
  0xd2   :  { %v276_v58 = vmul.f32 %v274_v55, %v232_v56 }
  0xd4   :  { %v279_v59 = vpack.c.bf16 %v276_v58, %v275_v57 }
  0xd6   :  { %352 = vmatmul.bf16.vlgmr.msra.gmra.mxu2 %v279_v59 }
 0x159   :  { %v353_v60 = vpop.f32.mrf.mxu2 }
 0x15a   :  { %367 = vst [vmem:[#allocation9] sm:$0xff] %v353_v60 }
 0x161   :  { %v355_v61 = vpop.f32.mrf.mxu2 }
 0x162   :  { %368 = vst [vmem:[#allocation9 + $0x8] sm:$0xff] %v355_v61 }
 0x163   :  { %381 = dma.vmem_to_hbm [thread:$0]  %s374_s5, 256, %s376_s8, [#allocation5], %s640_s9, %s640_s9, %s641_s10  }
 0x164   :  { %632 = dma.done.wait [#allocation5], 256  }
 0x165   :  { %633 = vsyncadd [#allocation5], 4294967040 }
 0x166   :  { %386 = vsyncpa [#allocation4], 1 }
 0x167   :  { %387 = vsyncpa [#allocation7], 1 }
 0x168   :  { %388 = vsyncpa [#allocation5], 1 }

</bundles_post_ra>
